<compile_context>
chip_gen: v5e
topology: v5e:2x2
jax: 0.10.0
libtpu: 0.0.40
codegen_flags: <defaults>
</compile_context>

<pallas_src>
import functools
import math

import jax
import jax.numpy as jnp
from jax.experimental import pallas as pl
from jax.experimental.pallas import tpu as pltpu


def _round_up(x, m):
    return ((x + m - 1) // m) * m


# ----------------------------------------------------------------------------
# Pallas kernel:
#   out[i, j] = b[j] + sum_k x[i, k] * W[k, j]        (accumulated over k-grid)
#             + xa[i, :] @ lora_b[:, j]               (added at the last k step)
# Grid = (B/tm, C/tn, D/tk).  The f32 output block is resident across the k
# axis (its index_map ignores k) and serves directly as the accumulator.
# ----------------------------------------------------------------------------
def _head_matmul_kernel(x_ref, w_ref, b_ref, xa_ref, lb_ref, o_ref):
    k = pl.program_id(2)

    @pl.when(k == 0)
    def _init():
        # Fold the bias in exactly once at accumulator (= output block) init.
        o_ref[...] = jnp.broadcast_to(b_ref[...], o_ref.shape)

    # bf16 x bf16 -> f32 accumulation on the MXU, accumulated into the
    # resident f32 output block.
    o_ref[...] += jnp.dot(x_ref[...], w_ref[...],
                          preferred_element_type=jnp.float32)

    @pl.when(k == pl.num_programs(2) - 1)
    def _lora():
        # Rank-R LoRA delta fused in on the last reduction step (tiny matmul).
        o_ref[...] += jnp.dot(xa_ref[...], lb_ref[...],
                              preferred_element_type=jnp.float32)


# ----------------------------------------------------------------------------
# One-time weight preparation (off the per-call hot path):
#   cast the dominant (D, C) weight to bf16 and pad it (plus bias / lora_b)
#   to lane-dense shapes exactly once.
# ----------------------------------------------------------------------------
def prepare_head_params(w_fc, b_fc, lora_b):
    D, C = w_fc.shape
    R = lora_b.shape[0]
    Dp = _round_up(D, 128)
    Cp = _round_up(C, 128)
    Rp = _round_up(R, 8)

    w_bf_p = jnp.pad(w_fc.astype(jnp.bfloat16), ((0, Dp - D), (0, Cp - C)))
    b_p = jnp.pad(b_fc.astype(jnp.float32), ((0, Cp - C),)).reshape(1, Cp)
    lb_bf_p = jnp.pad(lora_b.astype(jnp.bfloat16), ((0, Rp - R), (0, Cp - C)))
    return w_bf_p, b_p, lb_bf_p


# ----------------------------------------------------------------------------
# Fused classification head:  fc(x) + (x @ lora_a) @ lora_b
# ----------------------------------------------------------------------------
def coca_lora_head(x_feat, lora_a, w_bf_p, b_p, lb_bf_p, num_classes,
                   *, tm_max=512, tn_max=512, tk_max=2048,
                   out_dtype=jnp.float32):
    """x_feat: (B, D) f32 features; returns (B, num_classes) logits."""
    B, D = x_feat.shape
    Dp, Cp = w_bf_p.shape
    Rp = lb_bf_p.shape[0]
    R = lora_a.shape[1]
    C = num_classes

    # Tiny rank-R projection in f32 (B x R), done in plain JAX.
    xa = x_feat @ lora_a                                   # (B, R) f32

    # ---- tile selection (all static Python ints at trace time) -------------
    # Row tiles: 256-multiples when B is large (v6e/v7x MXU-native), else
    # 8-aligned and shrunk to the problem.
    if B >= 256:
        tm = min(tm_max, _round_up(B, 256))
    else:
        tm = min(tm_max, _round_up(B, 8))
    Bp = _round_up(B, tm)

    # Class tiles: largest 128-multiple <= tn_max dividing Cp.
    tn = min(tn_max, Cp)
    while Cp % tn:
        tn -= 128
    # v7x megacore: if B fits one row tile, expose >= 2 parallel class blocks.
    if Bp // tm == 1 and Cp // tn < 2 and Cp >= 256:
        tn = Cp // 2
        tn -= tn % 128
        while Cp % tn:
            tn -= 128

    # Reduction tiles: full D when it fits, else largest 128-multiple divisor.
    tk = Dp if Dp <= tk_max else tk_max
    while Dp % tk:
        tk -= 128

    # ---- per-call (hot path) prep: only small (B, *) tensors are touched ---
    x_p = jnp.pad(x_feat.astype(jnp.bfloat16), ((0, Bp - B), (0, Dp - D)))
    xa_p = jnp.pad(xa.astype(jnp.bfloat16), ((0, Bp - B), (0, Rp - R)))

    grid = (Bp // tm, Cp // tn, Dp // tk)

    # VMEM budget derived from the actual tile footprint (v7x-safe cap).
    vmem_bytes = (2 * (tm * tk + tk * tn) * 2      # bf16 x / W tiles (dbl buf)
                  + 2 * (tm * Rp + Rp * tn) * 2    # bf16 xa / lora_b tiles
                  + 2 * tm * tn * 4                # f32 resident output block
                  + 2 * tn * 4)                    # bias
    vmem_limit = max(16 << 20, min(2 * vmem_bytes + (4 << 20), 48 << 20))

    out_p = pl.pallas_call(
        _head_matmul_kernel,
        out_shape=jax.ShapeDtypeStruct((Bp, Cp), jnp.float32),
        grid_spec=pltpu.PrefetchScalarGridSpec(
            num_scalar_prefetch=0,
            grid=grid,
            in_specs=[
                pl.BlockSpec((tm, tk), lambda i, j, k: (i, k)),   # x tile
                pl.BlockSpec((tk, tn), lambda i, j, k: (k, j)),   # W_fc tile
                pl.BlockSpec((1, tn), lambda i, j, k: (0, j)),    # bias tile
                pl.BlockSpec((tm, Rp), lambda i, j, k: (i, 0)),   # xa tile
                pl.BlockSpec((Rp, tn), lambda i, j, k: (0, j)),   # lora_b tile
            ],
            out_specs=pl.BlockSpec((tm, tn), lambda i, j, k: (i, j)),
        ),
        compiler_params=pltpu.CompilerParams(
            dimension_semantics=("parallel", "parallel", "arbitrary"),
            vmem_limit_bytes=vmem_limit,
        ),
    )(x_p, w_bf_p, b_p, xa_p, lb_bf_p)

    return out_p[:B, :C].astype(out_dtype)


# ----------------------------------------------------------------------------
# Stand-in visual backbone (plain JAX glue): NCHW image -> (B, output_dim)
# ----------------------------------------------------------------------------
def stand_in_visual(x_nchw, proj):
    pooled = jnp.mean(x_nchw, axis=(2, 3))        # global average pool (B, C_in)
    return pooled @ proj                          # (B, output_dim)


# ----------------------------------------------------------------------------
# Parameter initialization (deterministic, mimicking the PyTorch __init__)
# ----------------------------------------------------------------------------
def init_params(key, c_in, output_dim, num_classes, lora_rank):
    k0, k1, k2, k3 = jax.random.split(key, 4)

    # stand-in backbone projection
    proj = jax.random.normal(k0, (c_in, output_dim), jnp.float32) * 0.1

    # nn.Linear(output_dim, num_classes) default init (stored as (D, C)).
    bound = 1.0 / math.sqrt(output_dim)
    w_fc = jax.random.uniform(k1, (output_dim, num_classes), jnp.float32,
                              -bound, bound)
    b_fc = jax.random.uniform(k2, (num_classes,), jnp.float32, -bound, bound)

    # lora_a: kaiming_uniform_(a=sqrt(5))  => U(-1/sqrt(r), 1/sqrt(r))
    la_bound = 1.0 / math.sqrt(lora_rank)
    lora_a = jax.random.uniform(k3, (output_dim, lora_rank), jnp.float32,
                                -la_bound, la_bound)
    # lora_b: zeros_ per the module's reset_parameters
    lora_b = jnp.zeros((lora_rank, num_classes), jnp.float32)

    return proj, w_fc, b_fc, lora_a, lora_b


# ----------------------------------------------------------------------------
# Full CoCaLoRA forward
# ----------------------------------------------------------------------------
def coca_lora_forward(x_nchw, proj, lora_a, w_bf_p, b_p, lb_bf_p, num_classes):
    feats = stand_in_visual(x_nchw, proj)         # (B, output_dim)
    feats = feats.reshape(feats.shape[0], -1)     # x.view(x.size(0), -1)
    return coca_lora_head(feats, lora_a, w_bf_p, b_p, lb_bf_p, num_classes)


if __name__ == "__main__":
    # small deterministic shapes
    B, C_IN, H, W = 2, 4, 16, 16
    OUTPUT_DIM = 32
    NUM_CLASSES = 8
    LORA_RANK = 4

    key = jax.random.PRNGKey(0)
    kx, kp, kb = jax.random.split(key, 3)

    x = jax.random.normal(kx, (B, C_IN, H, W), jnp.float32)  # NCHW input
    proj, w_fc, b_fc, lora_a, lora_b = init_params(
        kp, C_IN, OUTPUT_DIM, NUM_CLASSES, LORA_RANK)

    # The module initializes lora_b to zeros; use a nonzero lora_b in the test
    # so the LoRA path is actually exercised numerically.
    lora_b = 0.1 * jax.random.normal(kb, (LORA_RANK, NUM_CLASSES), jnp.float32)

    # One-time weight preparation (bf16 cast + padding), off the hot path.
    w_bf_p, b_p, lb_bf_p = prepare_head_params(w_fc, b_fc, lora_b)

    fwd = jax.jit(functools.partial(coca_lora_forward, num_classes=NUM_CLASSES))
    out = jax.block_until_ready(fwd(x, proj, lora_a, w_bf_p, b_p, lb_bf_p))
    assert out.shape == (B, NUM_CLASSES)
    assert out.dtype == jnp.float32

    # Reference with the same bf16 operand quantization (tight check).
    feats = stand_in_visual(x, proj)
    x_q = feats.astype(jnp.bfloat16).astype(jnp.float32)
    w_q = w_fc.astype(jnp.bfloat16).astype(jnp.float32)
    xa_q = (feats @ lora_a).astype(jnp.bfloat16).astype(jnp.float32)
    lb_q = lora_b.astype(jnp.bfloat16).astype(jnp.float32)
    ref_bf = x_q @ w_q + b_fc + xa_q @ lb_q
    assert jnp.allclose(out, ref_bf, atol=1e-3, rtol=1e-3), (
        float(jnp.max(jnp.abs(out - ref_bf))))

    # Full-precision module semantics (looser: bf16 quantization error only).
    ref_f32 = feats @ w_fc + b_fc + (feats @ lora_a) @ lora_b
    assert jnp.allclose(out, ref_f32, atol=2e-2, rtol=2e-2), (
        float(jnp.max(jnp.abs(out - ref_f32))))

    print("KERNEL_OK")
</pallas_src>

<mosaic_0001>
module attributes {stable_mosaic.version = 11 : i64} {
  func.func @_head_matmul_kernel(%arg0: i32, %arg1: i32, %arg2: i32, %arg3: memref<8x128xbf16, #tpu.memory_space<vmem>>, %arg4: memref<128x128xbf16, #tpu.memory_space<vmem>>, %arg5: memref<1x128xf32, #tpu.memory_space<vmem>>, %arg6: memref<8x8xbf16, #tpu.memory_space<vmem>>, %arg7: memref<8x128xbf16, #tpu.memory_space<vmem>>, %arg8: memref<8x128xf32, #tpu.memory_space<vmem>>) attributes {dimension_semantics = [#tpu.dimension_semantics<parallel>, #tpu.dimension_semantics<parallel>, #tpu.dimension_semantics<arbitrary>], iteration_bounds = array<i64: 1, 1, 1>, scalar_prefetch = 0 : i64, scratch_operands = 0 : i64, tpu.core_type = #tpu.core_type<tc>, window_params = [{transform_indices = @transform_0, window_bounds = array<i64: 8, 128>}, {transform_indices = @transform_1, window_bounds = array<i64: 128, 128>}, {transform_indices = @transform_2, window_bounds = array<i64: 1, 128>}, {transform_indices = @transform_3, window_bounds = array<i64: 8, 8>}, {transform_indices = @transform_4, window_bounds = array<i64: 8, 128>}, {transform_indices = @transform_5, window_bounds = array<i64: 8, 128>}]} {
    %c0_i32 = arith.constant 0 : i32
    %0 = arith.cmpi eq, %arg2, %c0_i32 : i32
    %1 = arith.extui %0 : i1 to i32
    %c0_i32_0 = arith.constant 0 : i32
    %2 = arith.cmpi ne, %1, %c0_i32_0 : i32
    scf.if %2 {
      %c0_10 = arith.constant 0 : index
      %c0_11 = arith.constant 0 : index
      %12 = vector.load %arg5[%c0_10, %c0_11] : memref<1x128xf32, #tpu.memory_space<vmem>>, vector<1x128xf32>
      %13 = vector.shape_cast %12 : vector<1x128xf32> to vector<1x128xf32>
      %14 = vector.broadcast %13 : vector<1x128xf32> to vector<8x128xf32>
      %c0_12 = arith.constant 0 : index
      %c0_13 = arith.constant 0 : index
      %15 = vector.load %arg8[%c0_12, %c0_13] : memref<8x128xf32, #tpu.memory_space<vmem>>, vector<8x128xf32>
      tpu.vector_store %arg8[%c0_12, %c0_13], %14 {strides = array<i32>} : memref<8x128xf32, #tpu.memory_space<vmem>>, vector<8x128xf32>,
    } else {
    }
    %c0 = arith.constant 0 : index
    %c0_1 = arith.constant 0 : index
    %3 = vector.load %arg8[%c0, %c0_1] : memref<8x128xf32, #tpu.memory_space<vmem>>, vector<8x128xf32>
    %c0_2 = arith.constant 0 : index
    %c0_3 = arith.constant 0 : index
    %4 = vector.load %arg3[%c0_2, %c0_3] : memref<8x128xbf16, #tpu.memory_space<vmem>>, vector<8x128xbf16>
    %c0_4 = arith.constant 0 : index
    %c0_5 = arith.constant 0 : index
    %5 = vector.load %arg4[%c0_4, %c0_5] : memref<128x128xbf16, #tpu.memory_space<vmem>>, vector<128x128xbf16>
    %cst = arith.constant dense<0.000000e+00> : vector<8x128xf32>
    %6 = tpu.matmul %4, %5, %cst {dimension_numbers = #tpu.dot_dimension_numbers<[1], [0], [0], [1], [0, 0, 1, 1], [], []>} : vector<8x128xbf16>, vector<128x128xbf16>, vector<8x128xf32> -> vector<8x128xf32>
    %7 = arith.addf %3, %6 : vector<8x128xf32>
    %c0_6 = arith.constant 0 : index
    %c0_7 = arith.constant 0 : index
    %8 = vector.load %arg8[%c0_6, %c0_7] : memref<8x128xf32, #tpu.memory_space<vmem>>, vector<8x128xf32>
    tpu.vector_store %arg8[%c0_6, %c0_7], %7 {strides = array<i32>} : memref<8x128xf32, #tpu.memory_space<vmem>>, vector<8x128xf32>,
    %c0_i32_8 = arith.constant 0 : i32
    %9 = arith.cmpi eq, %arg2, %c0_i32_8 : i32
    %10 = arith.extui %9 : i1 to i32
    %c0_i32_9 = arith.constant 0 : i32
    %11 = arith.cmpi ne, %10, %c0_i32_9 : i32
    scf.if %11 {
      %c0_10 = arith.constant 0 : index
      %c0_11 = arith.constant 0 : index
      %12 = vector.load %arg8[%c0_10, %c0_11] : memref<8x128xf32, #tpu.memory_space<vmem>>, vector<8x128xf32>
      %c0_12 = arith.constant 0 : index
      %c0_13 = arith.constant 0 : index
      %13 = vector.load %arg6[%c0_12, %c0_13] : memref<8x8xbf16, #tpu.memory_space<vmem>>, vector<8x8xbf16>
      %c0_14 = arith.constant 0 : index
      %c0_15 = arith.constant 0 : index
      %14 = vector.load %arg7[%c0_14, %c0_15] : memref<8x128xbf16, #tpu.memory_space<vmem>>, vector<8x128xbf16>
      %cst_16 = arith.constant dense<0.000000e+00> : vector<8x128xf32>
      %15 = tpu.matmul %13, %14, %cst_16 {dimension_numbers = #tpu.dot_dimension_numbers<[1], [0], [0], [1], [0, 0, 1, 1], [], []>} : vector<8x8xbf16>, vector<8x128xbf16>, vector<8x128xf32> -> vector<8x128xf32>
      %16 = arith.addf %12, %15 : vector<8x128xf32>
      %c0_17 = arith.constant 0 : index
      %c0_18 = arith.constant 0 : index
      %17 = vector.load %arg8[%c0_17, %c0_18] : memref<8x128xf32, #tpu.memory_space<vmem>>, vector<8x128xf32>
      tpu.vector_store %arg8[%c0_17, %c0_18], %16 {strides = array<i32>} : memref<8x128xf32, #tpu.memory_space<vmem>>, vector<8x128xf32>,
    } else {
    }
    return
  }
  func.func @transform_0(%arg0: i32, %arg1: i32, %arg2: i32) -> (i32, i32) {
    %c0_i32 = arith.constant 0 : i32
    return %arg0, %arg2 : i32, i32
  }
  func.func @transform_1(%arg0: i32, %arg1: i32, %arg2: i32) -> (i32, i32) {
    %c0_i32 = arith.constant 0 : i32
    return %arg2, %arg1 : i32, i32
  }
  func.func @transform_2(%arg0: i32, %arg1: i32, %arg2: i32) -> (i32, i32) {
    %c0_i32 = arith.constant 0 : i32
    %c0_i32_0 = arith.constant 0 : i32
    return %c0_i32, %arg1 : i32, i32
  }
  func.func @transform_3(%arg0: i32, %arg1: i32, %arg2: i32) -> (i32, i32) {
    %c0_i32 = arith.constant 0 : i32
    %c0_i32_0 = arith.constant 0 : i32
    return %arg0, %c0_i32 : i32, i32
  }
  func.func @transform_4(%arg0: i32, %arg1: i32, %arg2: i32) -> (i32, i32) {
    %c0_i32 = arith.constant 0 : i32
    %c0_i32_0 = arith.constant 0 : i32
    return %c0_i32, %arg1 : i32, i32
  }
  func.func @transform_5(%arg0: i32, %arg1: i32, %arg2: i32) -> (i32, i32) {
    %c0_i32 = arith.constant 0 : i32
    return %arg0, %arg1 : i32, i32
  }
}

</mosaic_0001>

<bundles_post_ra>
// kernel: coca_lora_forward.1
= control target key start
LH: loop header
LB: loop body
LE: loop exit
PB: predicated region body
PF: predicated region fallthrough
CT: control target
= control target key end

     0   :  { %vm121_vm0 = vcmask 1043456   ;;  %vm117_vm1 = vcmask 64512   ;;  %s255_s1 = inlined_call_operand.vmem [shape: bf16[128,128], index: 1, kind: input, shape index: {}]   ;;  %s256_s4 = inlined_call_operand.vmem [shape: bf16[8,128], index: 4, kind: input, shape index: {}]   ;;  %s257_s3 = inlined_call_operand.vmem [shape: bf16[8,8], index: 3, kind: input, shape index: {}]   ;;  %s258_s2 = inlined_call_operand.vmem [shape: f32[1,128], index: 2, kind: input, shape index: {}]   ;;  %s259_s0 = inlined_call_operand.vmem [shape: bf16[8,128], index: 0, kind: input, shape index: {}]   ;;  %s260_s5 = inlined_call_operand.vmem [shape: f32[8,128], index: 5, kind: output, shape index: {}]  }
   0x1   :  { %v184_v0 = vld [vmem:[%s255_s1 + $0x38] sm:$0xff]  ;;  %v183_v1 = vld [vmem:[%s255_s1 + $0x30] sm:$0xff]  ;;  %v116_v2 = vld [vmem:[%s256_s4] sm:$0xf] }
   0x2   :  { %96 = vmatpush.bf16.msra.mxu0 %v184_v0  ;;  %v123_v3 = vsel %vm121_vm0, %v116_v2, 0  ;;  %v115_v4 = vld [vmem:[%s257_s3] sm:$0xf]  ;;  %v182_v5 = vld [vmem:[%s255_s1 + $0x28] sm:$0xff]  ;;  %v180_v7 = vld [vmem:[%s255_s1 + $0x18] sm:$0xff] }
   0x3   :  { %132 = vmatpush.bf16.msra.mxu1 %v123_v3  ;;  %v181_v6 = vld [vmem:[%s255_s1 + $0x20] sm:$0xff]  ;;  %v179_v8 = vld [vmem:[%s255_s1 + $0x10] sm:$0xff]  ;;  %v178_v9 = vld [vmem:[%s255_s1 + $0x8] sm:$0xff] }
   0x4   :  { %v177_v10 = vld [vmem:[%s255_s1] sm:$0xff] }
   0x5   :  { %v31_v11 = vld [vmem:[%s259_s0] sm:$0xf] }
   0x6   :  { %97 = vmatpush.bf16.msra.mxu0 %v183_v1  ;;  %176 = vmatmul.msk.bf16.vlgmr.msra.gmra.mxu1 %vm117_vm1, %v115_v4  ;;  %v185_v14 = vld [vmem:[%s258_s2] ss:$0 sm:$0xff] }
   0xa   :  { %98 = vmatpush.bf16.msra.mxu0 %v182_v5 }
   0xe   :  { %99 = vmatpush.bf16.msra.mxu0 %v181_v6 }
  0x12   :  { %100 = vmatpush.bf16.msra.mxu0 %v180_v7 }
  0x16   :  { %101 = vmatpush.bf16.msra.mxu0 %v179_v8 }
  0x1a   :  { %102 = vmatpush.bf16.msra.mxu0 %v178_v9 }
  0x1e   :  { %103 = vmatpush.bf16.msra.mxu0 %v177_v10 }
  0x21   :  { %104 = vmatmul.bf16.vlgmr.msra.gmra.mxu0 %v31_v11 }
  0x83   :  { %v134_v12 = vpop.f32.mrf.mxu1 }
  0x8b   :  { %v136_v13 = vpop.f32.mrf.mxu1 }
  0x9e   :  { %v105_v15 = vpop.f32.mrf.mxu0 }
  0x9f   :  { %v109_v16 = vadd.f32 %v185_v14, %v105_v15 }
  0xa1   :  { %v138_v17 = vadd.f32 %v134_v12, %v109_v16 }
  0xa3   :  { %139 = vst [vmem:[%s260_s5] sm:$0xff] %v138_v17 }
  0xa6   :  { %v107_v18 = vpop.f32.mrf.mxu0 }

</bundles_post_ra>
